<compile_context>
chip_gen: v6e
topology: v6e:2x2x1
jax: 0.10.0
libtpu: 0.0.40
codegen_flags: <defaults>
</compile_context>

<pallas_src>
import jax
import jax.numpy as jnp
from jax.experimental import pallas as pl
from jax.experimental.pallas import tpu as pltpu

IN_DIM = 28 * 28   # 784
HID_DIM = 64
OUT_DIM = 3
HID_PAD = 128      # lane-dense padded hidden width
OUT_PAD = 128      # lane-dense padded output width


def _round_up(n, m):
    return ((n + m - 1) // m) * m


def encoder_kernel(x_ref, w1_ref, b1_ref, w2_ref, b2_ref, o_ref):
    # x_ref: (tm, 784) bf16 | w1_ref: (784, 128) bf16 | b1_ref: (1, 128) f32
    # w2_ref: (128, 128) bf16 | b2_ref: (1, 128) f32  | o_ref: (tm, 128) f32
    x = x_ref[...]
    h = jnp.dot(x, w1_ref[...], preferred_element_type=jnp.float32) + b1_ref[...]
    h = jnp.maximum(h, 0.0)
    y = jnp.dot(h.astype(w2_ref.dtype), w2_ref[...],
                preferred_element_type=jnp.float32) + b2_ref[...]
    o_ref[...] = y.astype(o_ref.dtype)


def encoder_forward(x, w1, b1, w2, b2, *, tile_m=512):
    """y = ReLU(x @ w1 + b1) @ w2 + b2, with w1:(784,64), b1:(1,64), w2:(64,3), b2:(1,3)."""
    B = x.shape[0]
    out_dtype = x.dtype

    # Batch tile: multiple of 16 (bf16 sublane packing), capped so tiny batches still work.
    tm = min(int(tile_m), _round_up(B, 16))
    tm = max(16, _round_up(tm, 16))
    B_pad = _round_up(B, tm)
    grid = (B_pad // tm,)

    # bf16 activations/weights (f32 accumulate in-kernel). Zero-pad batch to tile multiple.
    x_p = x.astype(jnp.bfloat16)
    if B_pad != B:
        x_p = jnp.pad(x_p, ((0, B_pad - B), (0, 0)))

    # Lane-dense padding. Padded hidden columns are exactly 0 after ReLU (w1 pad cols = 0,
    # b1 pad = 0), so they contribute nothing to the second matmul -> semantics preserved.
    w1_p = jnp.pad(w1, ((0, 0), (0, HID_PAD - HID_DIM))).astype(jnp.bfloat16)
    b1_p = jnp.pad(b1.reshape(1, HID_DIM).astype(jnp.float32),
                   ((0, 0), (0, HID_PAD - HID_DIM)))
    w2_p = jnp.pad(w2, ((0, HID_PAD - HID_DIM), (0, OUT_PAD - OUT_DIM))).astype(jnp.bfloat16)
    b2_p = jnp.pad(b2.reshape(1, OUT_DIM).astype(jnp.float32),
                   ((0, 0), (0, OUT_PAD - OUT_DIM)))

    cost = pl.CostEstimate(
        flops=2 * B_pad * (IN_DIM * HID_PAD + HID_PAD * OUT_PAD),
        transcendentals=0,
        bytes_accessed=(x_p.size * 2 + w1_p.size * 2 + w2_p.size * 2
                        + b1_p.size * 4 + b2_p.size * 4 + B_pad * OUT_PAD * 4),
    )

    out_pad = pl.pallas_call(
        encoder_kernel,
        out_shape=jax.ShapeDtypeStruct((B_pad, OUT_PAD), jnp.float32),
        grid_spec=pltpu.PrefetchScalarGridSpec(
            num_scalar_prefetch=0,
            grid=grid,
            in_specs=[
                pl.BlockSpec((tm, IN_DIM), lambda i: (i, 0)),        # x: tiled over batch
                pl.BlockSpec((IN_DIM, HID_PAD), lambda i: (0, 0)),   # w1: resident
                pl.BlockSpec((1, HID_PAD), lambda i: (0, 0)),        # b1: resident
                pl.BlockSpec((HID_PAD, OUT_PAD), lambda i: (0, 0)),  # w2: resident
                pl.BlockSpec((1, OUT_PAD), lambda i: (0, 0)),        # b2: resident
            ],
            out_specs=pl.BlockSpec((tm, OUT_PAD), lambda i: (i, 0)),
        ),
        compiler_params=pltpu.CompilerParams(
            dimension_semantics=("parallel",),            # batch axis shards across TCs (v7x)
            vmem_limit_bytes=32 * 1024 * 1024,            # headroom above v5e's 16 MiB default
        ),
        cost_estimate=cost,
    )(x_p, w1_p, b1_p, w2_p, b2_p)

    # Drop batch padding and the 125 zero-padded output lanes outside the kernel.
    return out_pad[:B, :OUT_DIM].astype(out_dtype)


def init_params(key, dtype=jnp.float32):
    # Shapes match nn.Linear(784,64) and nn.Linear(64,3), stored as (in, out).
    k1, k2, k3, k4 = jax.random.split(key, 4)
    w1 = jax.random.normal(k1, (IN_DIM, HID_DIM), dtype) * (1.0 / IN_DIM**0.5)
    b1 = jax.random.normal(k2, (1, HID_DIM), dtype) * 0.01
    w2 = jax.random.normal(k3, (HID_DIM, OUT_DIM), dtype) * (1.0 / HID_DIM**0.5)
    b2 = jax.random.normal(k4, (1, OUT_DIM), dtype) * 0.01
    return w1, b1, w2, b2


if __name__ == "__main__":
    key = jax.random.PRNGKey(0)
    kx, kp = jax.random.split(key)

    # Small test: B=24 is NOT a multiple of the tile, exercising the padding path;
    # tile_m=16 gives a 2-step grid even at this tiny batch.
    B = 24
    x = jax.random.normal(kx, (B, IN_DIM), jnp.float32)
    w1, b1, w2, b2 = init_params(kp)

    out = encoder_forward(x, w1, b1, w2, b2, tile_m=16)
    out = jax.block_until_ready(out)

    # Pure-JAX f32 reference (kernel uses bf16 inputs with f32 accumulation -> loose tol).
    ref = jnp.maximum(x @ w1 + b1, 0.0) @ w2 + b2
    assert out.shape == (B, OUT_DIM)
    assert jnp.allclose(out, ref, atol=2e-2, rtol=2e-2), float(jnp.max(jnp.abs(out - ref)))

    print("KERNEL_OK")
</pallas_src>

<mosaic_0001>
module attributes {stable_mosaic.version = 11 : i64} {
  func.func @encoder_kernel(%arg0: i32, %arg1: memref<16x784xbf16, #tpu.memory_space<vmem>>, %arg2: memref<784x128xbf16, #tpu.memory_space<vmem>>, %arg3: memref<1x128xf32, #tpu.memory_space<vmem>>, %arg4: memref<128x128xbf16, #tpu.memory_space<vmem>>, %arg5: memref<1x128xf32, #tpu.memory_space<vmem>>, %arg6: memref<16x128xf32, #tpu.memory_space<vmem>>) attributes {dimension_semantics = [#tpu.dimension_semantics<parallel>], iteration_bounds = array<i64: 2>, scalar_prefetch = 0 : i64, scratch_operands = 0 : i64, tpu.core_type = #tpu.core_type<tc>, window_params = [{transform_indices = @transform_0, window_bounds = array<i64: 16, 784>}, {pipeline_mode = #tpu.pipeline_mode<synchronous>, transform_indices = @transform_1, window_bounds = array<i64: 784, 128>}, {pipeline_mode = #tpu.pipeline_mode<synchronous>, transform_indices = @transform_2, window_bounds = array<i64: 1, 128>}, {pipeline_mode = #tpu.pipeline_mode<synchronous>, transform_indices = @transform_3, window_bounds = array<i64: 128, 128>}, {pipeline_mode = #tpu.pipeline_mode<synchronous>, transform_indices = @transform_4, window_bounds = array<i64: 1, 128>}, {transform_indices = @transform_5, window_bounds = array<i64: 16, 128>}]} {
    %c0 = arith.constant 0 : index
    %c0_0 = arith.constant 0 : index
    %0 = vector.load %arg1[%c0, %c0_0] : memref<16x784xbf16, #tpu.memory_space<vmem>>, vector<16x784xbf16>
    %c0_1 = arith.constant 0 : index
    %c0_2 = arith.constant 0 : index
    %1 = vector.load %arg2[%c0_1, %c0_2] : memref<784x128xbf16, #tpu.memory_space<vmem>>, vector<784x128xbf16>
    %cst = arith.constant dense<0.000000e+00> : vector<16x128xf32>
    %2 = tpu.matmul %0, %1, %cst {dimension_numbers = #tpu.dot_dimension_numbers<[1], [0], [0], [1], [0, 0, 1, 1], [], []>} : vector<16x784xbf16>, vector<784x128xbf16>, vector<16x128xf32> -> vector<16x128xf32>
    %c0_3 = arith.constant 0 : index
    %c0_4 = arith.constant 0 : index
    %3 = vector.load %arg3[%c0_3, %c0_4] : memref<1x128xf32, #tpu.memory_space<vmem>>, vector<1x128xf32>
    %4 = vector.broadcast %3 : vector<1x128xf32> to vector<16x128xf32>
    %5 = arith.addf %2, %4 : vector<16x128xf32>
    %cst_5 = arith.constant 0.000000e+00 : f32
    %6 = vector.broadcast %cst_5 : f32 to vector<16x128xf32>
    %7 = arith.maximumf %5, %6 : vector<16x128xf32>
    %8 = arith.truncf %7 : vector<16x128xf32> to vector<16x128xbf16>
    %c0_6 = arith.constant 0 : index
    %c0_7 = arith.constant 0 : index
    %9 = vector.load %arg4[%c0_6, %c0_7] : memref<128x128xbf16, #tpu.memory_space<vmem>>, vector<128x128xbf16>
    %cst_8 = arith.constant dense<0.000000e+00> : vector<16x128xf32>
    %10 = tpu.matmul %8, %9, %cst_8 {dimension_numbers = #tpu.dot_dimension_numbers<[1], [0], [0], [1], [0, 0, 1, 1], [], []>} : vector<16x128xbf16>, vector<128x128xbf16>, vector<16x128xf32> -> vector<16x128xf32>
    %c0_9 = arith.constant 0 : index
    %c0_10 = arith.constant 0 : index
    %11 = vector.load %arg5[%c0_9, %c0_10] : memref<1x128xf32, #tpu.memory_space<vmem>>, vector<1x128xf32>
    %12 = vector.broadcast %11 : vector<1x128xf32> to vector<16x128xf32>
    %13 = arith.addf %10, %12 : vector<16x128xf32>
    %c0_11 = arith.constant 0 : index
    %c0_12 = arith.constant 0 : index
    %14 = vector.load %arg6[%c0_11, %c0_12] : memref<16x128xf32, #tpu.memory_space<vmem>>, vector<16x128xf32>
    tpu.vector_store %arg6[%c0_11, %c0_12], %13 {strides = array<i32>} : memref<16x128xf32, #tpu.memory_space<vmem>>, vector<16x128xf32>,
    return
  }
  func.func @transform_0(%arg0: i32) -> (i32, i32) {
    %c0_i32 = arith.constant 0 : i32
    %c0_i32_0 = arith.constant 0 : i32
    return %arg0, %c0_i32 : i32, i32
  }
  func.func @transform_1(%arg0: i32) -> (i32, i32) {
    %c0_i32 = arith.constant 0 : i32
    %c0_i32_0 = arith.constant 0 : i32
    %c0_i32_1 = arith.constant 0 : i32
    return %c0_i32, %c0_i32_0 : i32, i32
  }
  func.func @transform_2(%arg0: i32) -> (i32, i32) {
    %c0_i32 = arith.constant 0 : i32
    %c0_i32_0 = arith.constant 0 : i32
    %c0_i32_1 = arith.constant 0 : i32
    return %c0_i32, %c0_i32_0 : i32, i32
  }
  func.func @transform_3(%arg0: i32) -> (i32, i32) {
    %c0_i32 = arith.constant 0 : i32
    %c0_i32_0 = arith.constant 0 : i32
    %c0_i32_1 = arith.constant 0 : i32
    return %c0_i32, %c0_i32_0 : i32, i32
  }
  func.func @transform_4(%arg0: i32) -> (i32, i32) {
    %c0_i32 = arith.constant 0 : i32
    %c0_i32_0 = arith.constant 0 : i32
    %c0_i32_1 = arith.constant 0 : i32
    return %c0_i32, %c0_i32_0 : i32, i32
  }
  func.func @transform_5(%arg0: i32) -> (i32, i32) {
    %c0_i32 = arith.constant 0 : i32
    %c0_i32_0 = arith.constant 0 : i32
    return %arg0, %c0_i32 : i32, i32
  }
}

</mosaic_0001>

<bundles_post_ra>
// kernel: tpu_custom_call.1
= control target key start
LH: loop header
LB: loop body
LE: loop exit
PB: predicated region body
PF: predicated region fallthrough
CT: control target
= control target key end

     0   :  { %10 = vsyncpa [#allocation3], 0  ;;  %s1851_s0 = inlined_call_operand.hbm [shape: bf16[32,784], index: 0, kind: input, shape index: {}]   ;;  %s1852_s1 = inlined_call_operand.hbm [shape: bf16[784,128], index: 1, kind: input, shape index: {}]   ;;  %s1853_s2 = inlined_call_operand.vmem [shape: f32[1,128], index: 2, kind: input, shape index: {}]   ;;  %s1854_s3 = inlined_call_operand.hbm [shape: bf16[128,128], index: 3, kind: input, shape index: {}]   ;;  %s1855_s4 = inlined_call_operand.vmem [shape: f32[1,128], index: 4, kind: input, shape index: {}]   ;;  %s1856_s5 = inlined_call_operand.hbm [shape: f32[32,128], index: 5, kind: output, shape index: {}]  }
   0x1   :  { %12 = vsyncpa [#allocation3 + $0x1], 0 }
   0x2   :  { %13 = vsyncpa [#allocation6], 0 }
   0x3   :  { %14 = vsyncpa [#allocation4], 0 }
   0x4   :  { %16 = vsyncpa [#allocation4 + $0x1], 0  ;;  %s1634_s18 = smov 0   ;;  %s1636_s19 = smov 0  }
   0x5   :  { %s1638_s20 = smov 0   ;;  %s1640_s21 = smov 0  }
   0x6 LB: > { %s1655_s22 = sadd.s32 4294967295, %s1590_s21   ;;  %s1109_s23 = sadd.s32 4294967294, %s1590_s21   ;;  %s1590_s21 = sphi %s1640_s21, %s1878_s21   ;;  %s1586_s20 = sphi %s1638_s20, %s1877_s20   ;;  %s1582_s19 = sphi %s1636_s19, %s1876_s19   ;;  %s1578_s18 = sphi %s1634_s18, %s1875_s18  }
   0x7   : > { %p42_p0 = scmp.ne.s32.totalorder %s1582_s19, %s1578_s18  ;;  %p1857_p1 = scmp.eq.s32.totalorder %s1655_s22, 0 }
   0x8   : > { %p156_p3 = scmp.eq.s32.totalorder %s1109_s23, 1  ;;  %p1110_p5 = scmp.ge.s32.totalorder %s1590_s21, 1 }
   0x9   : > { %p1664_p4 = por %p1857_p1, %p42_p0  ;;  %p163_p7 = scmp.lt.s32.totalorder %s1590_s21, 3 }
   0xa   : > { %p1669_p6 = por %p156_p3, %p42_p0  ;;  %s1592_s27 = smov [#allocation5]  }
   0xb   : > { %s1861_s24 = scalar_select %p1664_p4, 1, 0 }
   0xc   : > { %s1862_s25 = scalar_select %p1669_p6, 1, 0 }
   0xd   : > { %p1674_p8 = pnand %p1110_p5, %p163_p7  ;;  %s175_s28 = sshll.u32 %s1592_s27, 4  ;;  %s176_s28 = int_to_ptr.vmem [resolvable:$true] %s175_s28 }
   0xe   : > { %s1593_s30 = smov [#allocation7]   ;;  %s1453_s7 = scalar_lea.vmem %s176_s28, 6272 }
   0xf   : > { %s1863_s26 = scalar_select %p1674_p8, 1, 0 }
  0x10   : > { %p1312_p9 = pneg %p1674_p8  ;;  %s191_s6 = sshll.u32 %s1593_s30, 4  ;;  %s192_s6 = int_to_ptr.vmem [resolvable:$true] %s191_s6 }
  0x11   : > { %p1454_p13 = scmp.ne.s32.totalorder %s176_s28, %s1453_s7  ;;  %p1461_p5 = scmp.lt.s32.totalorder %s176_s28, %s176_s28 }
  0x12   : > { %p1683_p11 = pnand %p1312_p9, %p1857_p1  ;;  %p1462_p7 = scmp.lt.s32.totalorder %s1453_s7, %s1453_s7 }
  0x14   : > { %p1444_p12 = pneg %p1683_p11  ;;  %p1463_p10 = por %p1462_p7, %p1461_p5 }
  0x16   : > { %p1456_p0 = pnand %p1454_p13, %p1444_p12 }
  0x18   : > { %p1457_p3 = pneg %p1456_p0 }
  0x1a   : > { %p1464_p9 = pnand %p1463_p10, %p1457_p3 }
  0x1c   : > { %1467 = shalt.err (!%p1464_p9)
}
  0x1d   : > { %s1594_s8 = smov 64   ;;  %s1595_s9 = smov 4  }
  0x1e   : > { %1315 = dma.hbm_to_vmem [thread:$0]  (!%p1683_p11), %s1852_s1, 6272, %s176_s28, [#allocation6], %s1594_s8, %s1594_s8, %s1595_s9  }
  0x1f   : > { %s1479_s12 = scalar_lea.vmem %s192_s6, 1024  ;;  %p1487_p2 = scmp.lt.s32.totalorder %s192_s6, %s192_s6 }
  0x20   : > { %p1480_p1 = scmp.ne.s32.totalorder %s192_s6, %s1479_s12  ;;  %p1488_p6 = scmp.lt.s32.totalorder %s1479_s12, %s1479_s12 }
  0x22   : > { %p1482_p13 = pnand %p1480_p1, %p1444_p12  ;;  %p1489_p5 = por %p1488_p6, %p1487_p2 }
  0x24   : > { %p1483_p0 = pneg %p1482_p13 }
  0x26   : > { %p1490_p10 = pnand %p1489_p5, %p1483_p0 }
  0x28   : > { %1493 = shalt.err (!%p1490_p10)
}
  0x29   : > { %1318 = dma.hbm_to_vmem [thread:$0]  (!%p1683_p11), %s1854_s3, 1024, %s192_s6, [#allocation6], %s1594_s8, %s1594_s8, %s1595_s9  }
  0x2a   : > { %s1706_s15 = sadd.s32 1, %s1590_s21   ;;  %s29_s16 = sadd.s32 1, %s1586_s20 }
  0x2b   : > { %s26_s17 = ssub.s32 %s1590_s21, %s1706_s15  ;;  %p36_p1 = scmp.ne.s32.totalorder %s1586_s20, %s1582_s19 }
  0x2c   : > { %p27_p2 = scmp.eq.s32.totalorder %s26_s17, 0  ;;  %p37_p6 = scmp.eq.s32.totalorder %s1590_s21, 0 }
  0x2d   : > { %p1865_p12 = scmp.eq.s32.totalorder %s1655_s22, 1  ;;  %p1329_p7 = scmp.lt.s32.totalorder %s1590_s21, 2 }
  0x2e   : > { %s1722_s27 = scalar_select %p27_p2, %s1586_s20, %s29_s16  }
  0x2f   : > { %p1716_p3 = por %p1865_p12, %p36_p1  ;;  %p38_p9 = por %p37_p6, %p36_p1 }
  0x30   : > { %s208_s28 = sand.u32 1, %s1586_s20   ;;  %s1298_s30 = smul.u32 896, %s1590_s21 }
  0x31   : > { %s1866_s23 = scalar_select %p1716_p3, 1, 0 }
  0x32   : > { %s1297_s29 = smul.u32 56, %s208_s28  ;;  %p1726_p11 = pnand %p1329_p7, %p38_p9 }
  0x33   : > { %s1733_s9 = scalar_lea.hbm %s1851_s0, %s1298_s30  ;;  %s1737_s12 = scalar_lea.sflag [#allocation3], %s208_s28 }
  0x34   : > { %s212_s10 = scalar_lea.vmem [#allocation2], %s1297_s29  ;;  %s1494_s13 = scalar_lea.hbm %s1733_s9, 896 }
  0x35   : > { %s220_s11 = sshll.u32 %s212_s10, 4  ;;  %p1495_p13 = scmp.ne.s32.totalorder %s1733_s9, %s1494_s13  ;;  %s1735_s11 = int_to_ptr.vmem [resolvable:$true] %s220_s11 }
  0x36   : > { %p1496_p0 = pneg %p1726_p11  ;;  %s1499_s17 = scalar_lea.hbm %s1851_s0, 1792 }
  0x37   : > { %p1500_p1 = scmp.lt.s32.totalorder %s1733_s9, %s1851_s0  ;;  %p1501_p2 = scmp.lt.s32.totalorder %s1499_s17, %s1494_s13 }
  0x38   : > { %p1497_p5 = pnand %p1496_p0, %p1495_p13 }
  0x39   : > { %p1502_p6 = por %p1501_p2, %p1500_p1 }
  0x3a   : > { %p1498_p10 = pneg %p1497_p5 }
  0x3c   : > { %p1503_p12 = pnand %p1502_p6, %p1498_p10 }
  0x3e   : > { %1506 = shalt.err (!%p1503_p12)
}
  0x3f   : > { %s1507_s28 = scalar_lea.vmem %s1735_s11, 896  ;;  %s1596_s29 = smov [#allocation2]  }
  0x40   : > { %p1508_p7 = scmp.ne.s32.totalorder %s1735_s11, %s1507_s28  ;;  %s1512_s8 = sshll.u32 %s1596_s29, 4  ;;  %s1513_s8 = int_to_ptr.vmem [resolvable:$false] %s1512_s8 }
  0x41   : > { %s1514_s10 = scalar_lea.vmem %s1513_s8, 1792  ;;  %p1515_p5 = scmp.lt.s32.totalorder %s1735_s11, %s1513_s8 }
  0x42   : > { %p1510_p9 = pnand %p1508_p7, %p1496_p0  ;;  %p1516_p3 = scmp.lt.s32.totalorder %s1514_s10, %s1507_s28 }
  0x44   : > { %p1511_p13 = pneg %p1510_p9  ;;  %p1517_p4 = por %p1516_p3, %p1515_p5 }
  0x46   : > { %p1518_p8 = pnand %p1517_p4, %p1511_p13 }
  0x48   : > { %1521 = shalt.err (!%p1518_p8)
}
  0x49   : > { %s1597_s13 = smov 448   ;;  %s1598_s14 = smov 28  }
  0x4a   : > { %1322 = dma.hbm_to_vmem [thread:$0]  (!%p1726_p11), %s1733_s9, 896, %s1735_s11, %s1737_s12, %s1597_s13, %s1597_s13, %s1598_s14  }
  0x4b   : > { %p1868_p0 = scmp.ne.s32.totalorder %s1863_s26, 0 }
  0x4c   : > { %s1761_s16 = sand.u32 (!%p1868_p0), 1, %s1582_s19   ;;  %p1869_p4 = scmp.ne.s32.totalorder (!%p1868_p0), %s1861_s24, 0 }
  0x4d   : > { %232 = sbr.rel (%p1868_p0) target bundleno = 573 (0x23d), region = 40  ;;  %s235_s30 = scalar_lea.sflag (!%p1868_p0), [#allocation3], %s1761_s16 }
  0x4e   : > { %s1299_s17 = smul.u32 (!%p1868_p0), 56, %s1761_s16 }
  0x50   : > { %s1765_s7 = scalar_lea.vmem (!%p1868_p0), [#allocation2], %s1299_s17 }
  0x52   : > { %1565 = dma.done.wait (%p1869_p4), %s235_s30, 896  }
  0x53   : > { %1567 = vsyncadd (%p1869_p4), %s235_s30, 4294966400  ;;  %p1870_p8 = scmp.eq.s32.totalorder %s1655_s22, 0 }
  0x55   : > { %1569 = dma.done.wait (%p1870_p8), [#allocation6], 7296   ;;  %p1871_p3 = pmov %p1870_p8 }
  0x56   : > { %v1375_v0 = vld [vmem:[#allocation5 + $0x78] sm:$0xff]   ;;  %v1379_v4 = vld [vmem:[#allocation5 + $0x70] sm:$0xff]   ;;  %v1383_v8 = vld [vmem:[#allocation5 + $0x68] sm:$0xff]   ;;  %v1599_v38 = vmov 0.0   ;;  %vm1600_vm0 = vmmov 0   ;;  %vm718_vm1 = vcmask 130048  }
  0x57   : > { %1571 = vsyncadd (%p1871_p3), [#allocation6], 4294960000  ;;  %v1376_v1 = vld [vmem:[#allocation5 + $0x38] sm:$0xff]   ;;  %1194 = vmatprep.subr.bf16.mxu0 %v1375_v0  ;;  %v1380_v5 = vld [vmem:[#allocation5 + $0x30] sm:$0xff]   ;;  %s1120_s6 = sshll.u32 %s1761_s16, 4  ;;  %s1193_s29 = sshll.u32 %s1655_s22, 8 }
  0x58   : > { %v1377_v2 = vld [vmem:[#allocation5 + $0xf8] sm:$0xff]   ;;  %1195 = vmatpush3.bf16.msra.mxu0 %v1376_v1  ;;  %v1381_v6 = vld [vmem:[#allocation5 + $0xf0] sm:$0xff]   ;;  %v1384_v9 = vld [vmem:[#allocation5 + $0x28] sm:$0xff]   ;;  %s272_s12 = scalar_lea.vmem [#allocation8], %s1120_s6  ;;  %s1808_s13 = scalar_lea.hbm %s1856_s5, %s1193_s29 }
  0x59   : > { %v1378_v3 = vld [vmem:[#allocation5 + $0xb8] sm:$0xff]   ;;  %1216 = vmatprep.subr.bf16.mxu1 %v1377_v2  ;;  %1196 = vmatprep.subr.bf16.mxu0 %v1379_v4  ;;  %v1382_v7 = vld [vmem:[#allocation5 + $0xb0] sm:$0xff]   ;;  %v1385_v10 = vld [vmem:[#allocation5 + $0xe8] sm:$0xff]   ;;  %s1017_s28 = sshll.u32 %s272_s12, 4  ;;  %s1004_s14 = scalar_lea.sflag [#allocation4], %s1761_s16  ;;  %s1803_s28 = int_to_ptr.vmem [resolvable:$true] %s1017_s28 }
  0x5a   : > { %1217 = vmatpush3.bf16.msra.mxu1 %v1378_v3  ;;  %v1386_v11 = vld [vmem:[#allocation5 + $0xa8] sm:$0xff]   ;;  %v1387_v12 = vld [vmem:[#allocation5 + $0x60] sm:$0xff]   ;;  %v1391_v16 = vld [vmem:[#allocation5 + $0x58] sm:$0xff]   ;;  %s1522_s17 = scalar_lea.vmem %s1803_s28, 256  ;;  %p1872_p10 = scmp.ne.s32.totalorder %s1866_s23, 0 }
  0x5b   : > { %1218 = vmatprep.subr.bf16.mxu1 %v1381_v6  ;;  %v1388_v13 = vld [vmem:[#allocation5 + $0x20] sm:$0xff]   ;;  %v1392_v17 = vld [vmem:[#allocation5 + $0x18] sm:$0xff]   ;;  %v1395_v20 = vld [vmem:[#allocation5 + $0x50] sm:$0xff]   ;;  %p1523_p11 = scmp.ne.s32.totalorder %s1803_s28, %s1522_s17  ;;  %s1601_s22 = smov [#allocation8]  }
  0x5c   : > { %1197 = vmatpush3.bf16.msra.mxu0 %v1380_v5  ;;  %v1389_v14 = vld [vmem:[#allocation5 + $0xe0] sm:$0xff]   ;;  %v1393_v18 = vld [vmem:[#allocation5 + $0xd8] sm:$0xff]   ;;  %v1396_v21 = vld [vmem:[#allocation5 + $0x10] sm:$0xff]   ;;  %s1526_s30 = sshll.u32 %s1601_s22, 4  ;;  %s1527_s30 = int_to_ptr.vmem [resolvable:$false] %s1526_s30 }
  0x5d   : > { %1198 = vmatprep.subr.bf16.mxu0 %v1383_v8  ;;  %v1390_v15 = vld [vmem:[#allocation5 + $0xa0] sm:$0xff]   ;;  %v1394_v19 = vld [vmem:[#allocation5 + $0x98] sm:$0xff]   ;;  %v1397_v22 = vld [vmem:[#allocation5 + $0xd0] sm:$0xff]   ;;  %p1524_p1 = pnand %p1523_p11, %p1872_p10  ;;  %p1529_p6 = scmp.lt.s32.totalorder %s1803_s28, %s1527_s30 }
  0x5e   : > { %1219 = vmatpush3.bf16.msra.mxu1 %v1382_v7  ;;  %v1398_v23 = vld [vmem:[#allocation5 + $0x90] sm:$0xff]   ;;  %v1399_v24 = vld [vmem:[#allocation5 + $0x48] sm:$0xff]   ;;  %v1403_v28 = vld [vmem:[#allocation5 + $0x40] sm:$0xff]  }
  0x5f   : > { %1220 = vmatprep.subr.bf16.mxu1 %v1385_v10  ;;  %v1400_v25 = vld [vmem:[#allocation5 + $0x8] sm:$0xff]   ;;  %v1404_v29 = vld [vmem:[#allocation5] sm:$0xff]   ;;  %v1410_v34 = vld [vmem:[#allocation5 + $0x178] sm:$0xff]   ;;  %p1525_p2 = pneg %p1524_p1 }
  0x60   : > { %1199 = vmatpush3.bf16.msra.mxu0 %v1384_v9  ;;  %v1401_v26 = vld [vmem:[#allocation5 + $0xc8] sm:$0xff]   ;;  %v1405_v30 = vld [vmem:[#allocation5 + $0xc0] sm:$0xff]   ;;  %v1413_v36 = vld [vmem:[%s1765_s7 + $0xc] ss:$28 sps:$4 sm:$0xff]  }
  0x61   : > { %1200 = vmatprep.subr.bf16.mxu0 %v1387_v12  ;;  %v1402_v27 = vld [vmem:[#allocation5 + $0x88] sm:$0xff]   ;;  %v1409_v33 = vld [vmem:[#allocation5 + $0x80] sm:$0xff]   ;;  %v1414_v37 = vld [vmem:[#allocation5 + $0x138] sm:$0xff]   ;;  %795 = vmatprep.mubr.bf16.mxu1 %v1413_v36 }
  0x62   : > { %1221 = vmatpush3.bf16.msra.mxu1 %v1386_v11  ;;  %v1406_v31 = vld [vmem:[%s1765_s7] ss:$28 sps:$4 sm:$0xff]   ;;  %v1411_v35 = vld [vmem:[%s1765_s7 + $0x8] ss:$28 sps:$4 sm:$0xff]   ;;  %v1432_v50 = vld [vmem:[%s1765_s7 + $0x14] ss:$28 sps:$4 sm:$0xff]  }
  0x63   : > { %1222 = vmatprep.subr.bf16.mxu1 %v1389_v14  ;;  %v1408_v32 = vld [vmem:[%s1765_s7 + $0x4] ss:$28 sps:$4 sm:$0xff]   ;;  %v1419_v43 = vld [vmem:[#allocation5 + $0x160] sm:$0xff]   ;;  %v1421_v45 = vld [vmem:[#allocation5 + $0x158] sm:$0xff]  }
  0x64   : > { %1201 = vmatpush3.bf16.msra.mxu0 %v1388_v13  ;;  %754 = vmatprep.mubr.bf16.mxu0 %v1408_v32  ;;  %v1415_v39 = vld [vmem:[#allocation5 + $0x170] sm:$0xff]   ;;  %v1417_v41 = vld [vmem:[#allocation5 + $0x168] sm:$0xff]   ;;  %v1420_v44 = vld [vmem:[#allocation5 + $0x120] sm:$0xff]  }
  0x65   : > { %1202 = vmatprep.subr.bf16.mxu0 %v1391_v16  ;;  %v1416_v40 = vld [vmem:[#allocation5 + $0x130] sm:$0xff]   ;;  %v1418_v42 = vld [vmem:[#allocation5 + $0x128] sm:$0xff]   ;;  %v1422_v46 = vld [vmem:[#allocation5 + $0x118] sm:$0xff]  }
  0x66   : > { %1223 = vmatpush3.bf16.msra.mxu1 %v1390_v15  ;;  %v1423_v47 = vld [vmem:[#allocation5 + $0x150] sm:$0xff]   ;;  %v1429_v48 = vld [vmem:[#allocation5 + $0x180] sm:$0xff]   ;;  %v1425_v51 = vld [vmem:[#allocation5 + $0x148] sm:$0xff]  }
  0x67   : > { %1224 = vmatprep.subr.bf16.mxu1 %v1393_v18  ;;  %v1424_v49 = vld [vmem:[#allocation5 + $0x110] sm:$0xff]   ;;  %v1433_v52 = vld [vmem:[%s1765_s7 + $0x18] ss:$28 sps:$4 sm:$0xff]  }
  0x68   : > { %1203 = vmatpush3.bf16.msra.mxu0 %v1392_v17  ;;  %v1426_v53 = vld [vmem:[#allocation5 + $0x108] sm:$0xff]   ;;  %v1427_v54 = vld [vmem:[#allocation5 + $0x140] sm:$0xff]   ;;  %v1435_v58 = vld [vmem:[#allocation7 + $0x30] sm:$0xff]  }
  0x69   : > { %1204 = vmatprep.subr.bf16.mxu0 %v1395_v20  ;;  %v1428_v55 = vld [vmem:[#allocation5 + $0x100] sm:$0xff]   ;;  %v1436_v59 = vld [vmem:[#allocation7 + $0x28] sm:$0xff]   ;;  %v1437_v60 = vld [vmem:[#allocation7 + $0x20] sm:$0xff]  }
  0x6a   : > { %1225 = vmatpush3.bf16.msra.mxu1 %v1394_v19  ;;  %v1430_v56 = vld [vmem:[%s1765_s7 + $0x10] ss:$28 sps:$4 sm:$0xff]   ;;  %v1441_v0 = vld [vmem:[#allocation7] sm:$0xff]   ;;  %v1121_v13 = vld [vmem:[%s1853_s2] ss:$0 sm:$0xff]  ;;  %s1528_s7 = scalar_lea.vmem %s1527_s30, 512 }
  0x6b   : > { %1226 = vmatprep.subr.bf16.mxu1 %v1397_v22  ;;  %v1434_v57 = vld [vmem:[#allocation7 + $0x38] sm:$0xff]   ;;  %v1439_v62 = vld [vmem:[#allocation7 + $0x10] sm:$0xff]   ;;  %v1440_v63 = vld [vmem:[#allocation7 + $0x8] sm:$0xff]   ;;  %p1530_p12 = scmp.lt.s32.totalorder %s1528_s7, %s1522_s17 }
  0x6c   : > { %1205 = vmatpush3.bf16.msra.mxu0 %v1396_v21  ;;  %v1438_v61 = vld [vmem:[#allocation7 + $0x18] sm:$0xff]  }
  0x6d   : > { %1206 = vmatprep.subr.bf16.mxu0 %v1399_v24  ;;  %p1531_p7 = por %p1530_p12, %p1529_p6 }
  0x6e   : > { %1227 = vmatpush3.bf16.msra.mxu1 %v1398_v23 }
  0x6f   : > { %1228 = vmatprep.subr.bf16.mxu1 %v1401_v26  ;;  %p1532_p9 = pnand %p1531_p7, %p1525_p2 }
  0x70   : > { %1207 = vmatpush3.bf16.msra.mxu0 %v1400_v25 }
  0x71   : > { %1208 = vmatprep.subr.bf16.mxu0 %v1403_v28 }
  0x72   : > { %1229 = vmatpush3.bf16.msra.mxu1 %v1402_v27 }
  0x73   : > { %1230 = vmatprep.subr.bf16.mxu1 %v1405_v30 }
  0x74   : > { %1209 = vmatpush3.bf16.msra.mxu0 %v1404_v29 }
  0x75   : > { %1238 = vmatprep.subr.bf16.mxu0 %v1410_v34 }
  0x76   : > { %1231 = vmatpush3.bf16.msra.mxu1 %v1409_v33 }
  0x77   : > { %755 = vmatmul.mubr.bf16.vlgmr.msra.gmra.mxu0 %v1406_v31  ;;  %1271 = vmatprep.subr.bf16.mxu1 %v1599_v38 }
  0x78   : > { %1239 = vmatpush3.bf16.msra.mxu0 %v1414_v37  ;;  %836 = vmatprep.mubr.bf16.mxu0 %v1432_v50 }
  0x79   : > { %796 = vmatmul.mubr.bf16.vlgmr.msra.gmra.mxu1 %v1411_v35  ;;  %1240 = vmatprep.subr.bf16.mxu0 %v1415_v39  ;;  %v1179_v35 = vld [vmem:[%s1855_s4] ss:$0 sm:$0xff] }
  0x7a   : > { %1273 = vmatprep.mubr.msk.bf16.mxu1 %vm1600_vm0, %v1599_v38  ;;  %1272 = vmatpush3.bf16.msra.mxu1 %v1429_v48 }
  0x7b   : > { %1277 = vmatprep.subr.bf16.mxu1 %v1599_v38 }
  0x7c   : > { %1241 = vmatpush3.bf16.msra.mxu0 %v1416_v40 }
  0x7d   : > { %1242 = vmatprep.subr.bf16.mxu0 %v1417_v41 }
  0x80   : > { %1243 = vmatpush3.bf16.msra.mxu0 %v1418_v42 }
  0x81   : > { %1244 = vmatprep.subr.bf16.mxu0 %v1419_v43  ;;  %1274 = vmatmul.mubr.msk.bf16.vlgmr.msra.gmra.mxu1 %vm718_vm1, %v1433_v52 }
  0x82   : > { %1293 = vmatprep.mubr.msk.bf16.mxu1 %vm1600_vm0, %v1599_v38  ;;  %1278 = vmatpush3.bf16.msra.mxu1 %v1434_v57 }
  0x83   : > { %1279 = vmatprep.subr.bf16.mxu1 %v1599_v38 }
  0x84   : > { %1245 = vmatpush3.bf16.msra.mxu0 %v1420_v44 }
  0x85   : > { %1246 = vmatprep.subr.bf16.mxu0 %v1421_v45 }
  0x86   : > { %1280 = vmatpush3.bf16.msra.mxu1 %v1435_v58 }
  0x87   : > { %1281 = vmatprep.subr.bf16.mxu1 %v1599_v38 }
  0x88   : > { %1247 = vmatpush3.bf16.msra.mxu0 %v1422_v46 }
  0x89   : > { %1248 = vmatprep.subr.bf16.mxu0 %v1423_v47 }
  0x8a   : > { %1282 = vmatpush3.bf16.msra.mxu1 %v1436_v59 }
  0x8b   : > { %1283 = vmatprep.subr.bf16.mxu1 %v1599_v38 }
  0x8c   : > { %1249 = vmatpush3.bf16.msra.mxu0 %v1424_v49 }
  0x8d   : > { %1250 = vmatprep.subr.bf16.mxu0 %v1425_v51 }
  0x8e   : > { %1284 = vmatpush3.bf16.msra.mxu1 %v1437_v60 }
  0x8f   : > { %1285 = vmatprep.subr.bf16.mxu1 %v1599_v38 }
  0x90   : > { %1251 = vmatpush3.bf16.msra.mxu0 %v1426_v53 }
  0x91   : > { %1252 = vmatprep.subr.bf16.mxu0 %v1427_v54 }
  0x92   : > { %1286 = vmatpush3.bf16.msra.mxu1 %v1438_v61 }
  0x93   : > { %1287 = vmatprep.subr.bf16.mxu1 %v1599_v38 }
  0x94   : > { %1253 = vmatpush3.bf16.msra.mxu0 %v1428_v55 }
  0x96   : > { %1288 = vmatpush3.bf16.msra.mxu1 %v1439_v62 }
  0x97   : > { %837 = vmatmul.mubr.bf16.vlgmr.msra.gmra.mxu0 %v1430_v56  ;;  %1289 = vmatprep.subr.bf16.mxu1 %v1599_v38 }
  0x9a   : > { %1290 = vmatpush3.bf16.msra.mxu1 %v1440_v63 }
  0x9b   : > { %1291 = vmatprep.subr.bf16.mxu1 %v1599_v38 }
  0x9e   : > { %1292 = vmatpush3.bf16.msra.mxu1 %v1441_v0 }
 0x137   : > { %v1210_v4 = vpop.f32.mrf.mxu0 }
 0x139   : > { %v1232_v1 = vpop.f32.mrf.mxu1  ;;  %v1211_v7 = vpop.f32.mrf.mxu0 }
 0x13a   : > { %v1212_v12 = vadd.f32 %v1211_v7, %v1210_v4 }
 0x13b   : > { %v1233_v2 = vpop.f32.mrf.mxu1  ;;  %v1213_v10 = vpop.f32.mrf.mxu0 }
 0x13c   : > { %v757_v15 = vadd.f32 %v1212_v12, %v1121_v13  ;;  %v1234_v16 = vadd.f32 %v1233_v2, %v1232_v1 }
 0x13d   : > { %v1235_v3 = vpop.f32.mrf.mxu1  ;;  %v1214_v14 = vpop.f32.mrf.mxu0 }
 0x13e   : > { %v1215_v17 = vadd.f32 %v1214_v14, %v1213_v10  ;;  %v798_v20 = vadd.f32 %v1234_v16, %v757_v15 }
 0x13f   : > { %v1236_v5 = vpop.f32.mrf.mxu1 }
 0x140   : > { %v760_v21 = vadd.f32 %v1215_v17, %v1121_v13  ;;  %v1237_v22 = vadd.f32 %v1236_v5, %v1235_v3 }
 0x141   : > { %v879_v6 = vpop.f32.mrf.mxu1 }
 0x142   : > { %v801_v27 = vadd.f32 %v1237_v22, %v760_v21 }
 0x143   : > { %v1275_v8 = vpop.f32.mrf.mxu1 }
 0x145   : > { %v882_v9 = vpop.f32.mrf.mxu1 }
 0x147   : > { %v1276_v11 = vpop.f32.mrf.mxu1 }
 0x157   : > { %v1254_v18 = vpop.f32.mrf.mxu0 }
 0x159   : > { %v1255_v19 = vpop.f32.mrf.mxu0 }
 0x15a   : > { %v1256_v23 = vadd.f32 %v1255_v19, %v1254_v18 }
 0x15b   : > { %v1257_v24 = vpop.f32.mrf.mxu0 }
 0x15c   : > { %v839_v25 = vadd.f32 %v1256_v23, %v798_v20 }
 0x15d   : > { %v1258_v26 = vpop.f32.mrf.mxu0 }
 0x15e   : > { %v1259_v28 = vadd.f32 %v1258_v26, %v1257_v24  ;;  %v880_v29 = vadd.f32 %v879_v6, %v839_v25 }
 0x160   : > { %v842_v30 = vadd.f32 %v1259_v28, %v801_v27  ;;  %v886_v32 = vmax.f32 %v880_v29, 0.0 }
 0x162   : > { %v883_v31 = vadd.f32 %v882_v9, %v842_v30 }
 0x164   : > { %v887_v33 = vmax.f32 %v883_v31, 0.0 }
 0x166   : > { %v888_v34 = vpack.c.bf16 %v887_v33, %v886_v32 }
 0x168   : > { %1294 = vmatmul.mubr.bf16.vlgmr.msra.gmra.mxu1 %v888_v34 }
 0x228   : > { %v994_v36 = vpop.f32.mrf.mxu1 }
 0x229   : > { %v995_v37 = vadd.f32 %v1179_v35, %v994_v36 }
 0x22a   : > { %v1295_v38 = vpop.f32.mrf.mxu1 }
 0x22b   : > { %1001 = vst [vmem:[%s272_s12] sm:$0xff] %v995_v37 }
 0x22c   : > { %v997_v39 = vpop.f32.mrf.mxu1 }
 0x22d   : > { %v998_v40 = vadd.f32 %v1179_v35, %v997_v39 }
 0x22e   : > { %v1296_v41 = vpop.f32.mrf.mxu1 }
 0x22f   : > { %1002 = vst [vmem:[%s272_s12 + $0x8] sm:$0xff] %v998_v40 }
 0x230   : > { %1535 = shalt.err (!%p1532_p9)
}
 0x231   : > { %s1536_s24 = scalar_lea.hbm %s1808_s13, 256  ;;  %s1540_s9 = scalar_lea.hbm %s1856_s5, 512 }
 0x232   : > { %p1537_p13 = scmp.ne.s32.totalorder %s1808_s13, %s1536_s24  ;;  %p1541_p4 = scmp.lt.s32.totalorder %s1808_s13, %s1856_s5 }
 0x233   : > { %p1542_p8 = scmp.lt.s32.totalorder %s1540_s9, %s1536_s24 }
 0x234   : > { %p1538_p5 = pnand %p1537_p13, %p1872_p10 }
 0x235   : > { %p1543_p3 = por %p1542_p8, %p1541_p4 }
 0x236   : > { %p1539_p0 = pneg %p1538_p5 }
 0x238   : > { %p1544_p11 = pnand %p1543_p3, %p1539_p0 }
 0x23a   : > { %1547 = shalt.err (!%p1544_p11)
}
 0x23b   : > { %s1602_s29 = smov 128   ;;  %s1603_s8 = smov 8  }
 0x23c   : > { %1310 = dma.vmem_to_hbm [thread:$0]  (%p1872_p10), %s1803_s28, 256, %s1808_s13, %s1004_s14, %s1602_s29, %s1602_s29, %s1603_s8  }
 0x23d PF: > { %s1032_s10 = sand.u32 1, %s1578_s18   ;;  %p1873_p1 = scmp.ne.s32.totalorder %s1862_s25, 0 }
 0x23e   : > { %p1874_p2 = scmp.ge.s32.totalorder %s1590_s21, 2  ;;  %s1033_s17 = scalar_lea.sflag [#allocation4], %s1032_s10 }
 0x240   : > { %p1324_p6 = pnand %p1874_p2, %p1873_p1 }
 0x242   : > { %p1325_p12 = pneg %p1324_p6 }
 0x244   : > { %1573 = dma.done.wait (%p1325_p12), %s1033_s17, 256  }
 0x245   : > { %1575 = vsyncadd (%p1325_p12), %s1033_s17, 4294967040  ;;  %p19_p7 = scmp.ge.s32.totalorder %s1706_s15, 4   ;;  %s1875_s18 = smov %s1582_s19 }
 0x246   : > { %s1876_s19 = smov %s1586_s20  ;;  %s1877_s20 = smov %s1722_s27 }
 0x247   : > { %s1878_s21 = smov %s1706_s15  ;;  %21 = sbr.rel (!%p19_p7) target bundleno = 6 (0x6), region = 93 }
 0x24c   :  { %1038 = vsyncpa [#allocation3], 1 }
 0x24d   :  { %1040 = vsyncpa [#allocation3 + $0x1], 1 }
 0x24e   :  { %1041 = vsyncpa [#allocation6], 1 }
 0x24f   :  { %1042 = vsyncpa [#allocation4], 1 }
 0x250   :  { %1044 = vsyncpa [#allocation4 + $0x1], 1 }

</bundles_post_ra>
